<compile_context>
chip_gen: v7x
topology: tpu7x:2x2x1
jax: 0.10.0
libtpu: 0.0.40
codegen_flags: <defaults>
</compile_context>

<pallas_src>
import functools
import math

import jax
import jax.numpy as jnp
from jax import lax
from jax.experimental import pallas as pl
from jax.experimental.pallas import tpu as pltpu


_INV_SQRT2 = 1.0 / math.sqrt(2.0)


def _gelu_exact(x):
    # PyTorch nn.GELU() default: 0.5 * x * (1 + erf(x / sqrt(2)))
    return 0.5 * x * (1.0 + lax.erf(x * _INV_SQRT2))


def _fused_kernel(ids_ref, emb_ref, w1_ref, b1_ref, w2_ref, b2_ref,
                  h_out_ref, x_out_ref):
    """One fat row-tile of tokens: fused embedding gather + 2x (Linear + GELU).

    Dropout layers are identity (eval mode).
    """
    ids = ids_ref[...]                    # [T, 1] int32
    tile_rows = ids.shape[0]
    vocab = emb_ref.shape[0]

    # Embedding gather as a one-hot matmul on the MXU against the
    # VMEM-resident table.  Exact in f32: each output row is one table row * 1.0.
    # TODO(synk): for large vocabularies replace with a DMA row-gather
    # (table left in HBM via memory_space=pl.ANY + pltpu.make_async_copy).
    onehot = (ids == lax.broadcasted_iota(jnp.int32, (tile_rows, vocab), 1)
              ).astype(jnp.float32)
    h = jnp.dot(onehot, emb_ref[...], preferred_element_type=jnp.float32)  # [T,H] f32
    h_out_ref[...] = h

    # MLP hot path: bf16 matmul inputs, f32 accumulation; bias/GELU in f32.
    x = jnp.dot(h.astype(jnp.bfloat16), w1_ref[...],
                preferred_element_type=jnp.float32) + b1_ref[...]
    x = _gelu_exact(x)
    # dropout1: identity (eval / inference mode)
    x = jnp.dot(x.astype(jnp.bfloat16), w2_ref[...],
                preferred_element_type=jnp.float32) + b2_ref[...]
    x_out_ref[...] = _gelu_exact(x)
    # dropout2: identity (eval / inference mode)


def _round_up(x, m):
    return (x + m - 1) // m * m


@functools.partial(jax.jit, static_argnames=("row_tile",))
def backbone_forward(input_ids, emb_table, w1, b1, w2, b2, *, row_tile=256):
    """Returns (hidden_states [B,S,H], x [B,S,H]) matching BackboneModel.forward."""
    B, S = input_ids.shape
    V, H = emb_table.shape
    M = B * S

    # Fat row tiles; for tiny problems this collapses to a single block
    # (grid of 1 -> no per-step pipeline bookkeeping at all).
    tile = min(row_tile, _round_up(M, 8))
    M_pad = _round_up(M, tile)

    ids = input_ids.reshape(M, 1).astype(jnp.int32)
    if M_pad != M:
        ids = jnp.pad(ids, ((0, M_pad - M), (0, 0)))  # pad rows sliced off below

    # PyTorch Linear computes x @ W.T + b; pre-transpose weights and cast them
    # to bf16 (MXU accumulates in f32 inside the kernel).
    w1_t = w1.T.astype(jnp.bfloat16)      # [H, H]
    w2_t = w2.T.astype(jnp.bfloat16)      # [H, H]
    b1_2d = b1.reshape(1, H).astype(jnp.float32)
    b2_2d = b2.reshape(1, H).astype(jnp.float32)
    emb_f32 = emb_table.astype(jnp.float32)

    grid = (M_pad // tile,)

    h_pad, x_pad = pl.pallas_call(
        _fused_kernel,
        out_shape=(
            jax.ShapeDtypeStruct((M_pad, H), jnp.float32),   # hidden_states
            jax.ShapeDtypeStruct((M_pad, H), jnp.float32),   # x
        ),
        grid_spec=pltpu.PrefetchScalarGridSpec(
            num_scalar_prefetch=0,
            grid=grid,
            in_specs=[
                pl.BlockSpec((tile, 1), lambda i: (i, 0)),   # token ids, tiled over rows
                pl.BlockSpec((V, H), lambda i: (0, 0)),      # embedding table (resident)
                pl.BlockSpec((H, H), lambda i: (0, 0)),      # W1^T bf16 (resident)
                pl.BlockSpec((1, H), lambda i: (0, 0)),      # b1
                pl.BlockSpec((H, H), lambda i: (0, 0)),      # W2^T bf16 (resident)
                pl.BlockSpec((1, H), lambda i: (0, 0)),      # b2
            ],
            out_specs=(
                pl.BlockSpec((tile, H), lambda i: (i, 0)),
                pl.BlockSpec((tile, H), lambda i: (i, 0)),
            ),
        ),
        compiler_params=pltpu.CompilerParams(
            dimension_semantics=("parallel",),               # row tiles shard across TCs
        ),
    )(ids, emb_f32, w1_t, b1_2d, w2_t, b2_2d)

    hidden_states = h_pad[:M].reshape(B, S, H)
    x = x_pad[:M].reshape(B, S, H)
    return hidden_states, x


def _reference(input_ids, emb_table, w1, b1, w2, b2):
    h = jnp.take(emb_table, input_ids, axis=0).astype(jnp.float32)
    x = _gelu_exact(h @ w1.T + b1)
    x = _gelu_exact(x @ w2.T + b2)
    return h, x


if __name__ == "__main__":
    # Small config consistent with the module: vocab=64, hidden=32, batch=2, seq=8.
    VOCAB, HIDDEN, BATCH, SEQ = 64, 32, 2, 8

    key = jax.random.PRNGKey(0)
    k_emb, k_w1, k_b1, k_w2, k_b2, k_ids = jax.random.split(key, 6)

    emb_table = jax.random.normal(k_emb, (VOCAB, HIDDEN), dtype=jnp.float32) * 0.02
    w1 = jax.random.normal(k_w1, (HIDDEN, HIDDEN), dtype=jnp.float32) * (1.0 / math.sqrt(HIDDEN))
    b1 = jax.random.normal(k_b1, (HIDDEN,), dtype=jnp.float32) * 0.01
    w2 = jax.random.normal(k_w2, (HIDDEN, HIDDEN), dtype=jnp.float32) * (1.0 / math.sqrt(HIDDEN))
    b2 = jax.random.normal(k_b2, (HIDDEN,), dtype=jnp.float32) * 0.01

    input_ids = jax.random.randint(k_ids, (BATCH, SEQ), 0, VOCAB, dtype=jnp.int32)

    hs, x = backbone_forward(input_ids, emb_table, w1, b1, w2, b2)
    jax.block_until_ready((hs, x))

    hs_ref, x_ref = _reference(input_ids, emb_table, w1, b1, w2, b2)
    assert hs.shape == (BATCH, SEQ, HIDDEN) and x.shape == (BATCH, SEQ, HIDDEN)
    # Fused one-hot gather is exact in f32.
    assert jnp.allclose(hs, hs_ref, atol=1e-5, rtol=1e-5)
    # MLP uses bf16 matmul inputs with f32 accumulation -> small numeric delta.
    assert jnp.allclose(x, x_ref, atol=5e-3, rtol=2e-2)

    print("KERNEL_OK")
</pallas_src>

<mosaic_0001>
module attributes {stable_mosaic.version = 11 : i64} {
  func.func @_fused_kernel(%arg0: i32, %arg1: memref<16x1xi32, #tpu.memory_space<vmem>>, %arg2: memref<64x32xf32, #tpu.memory_space<vmem>>, %arg3: memref<32x32xbf16, #tpu.memory_space<vmem>>, %arg4: memref<1x32xf32, #tpu.memory_space<vmem>>, %arg5: memref<32x32xbf16, #tpu.memory_space<vmem>>, %arg6: memref<1x32xf32, #tpu.memory_space<vmem>>, %arg7: memref<16x32xf32, #tpu.memory_space<vmem>>, %arg8: memref<16x32xf32, #tpu.memory_space<vmem>>) attributes {dimension_semantics = [#tpu.dimension_semantics<parallel>], iteration_bounds = array<i64: 1>, scalar_prefetch = 0 : i64, scratch_operands = 0 : i64, tpu.core_type = #tpu.core_type<tc>, window_params = [{transform_indices = @transform_0, window_bounds = array<i64: 16, 1>}, {pipeline_mode = #tpu.pipeline_mode<synchronous>, transform_indices = @transform_1, window_bounds = array<i64: 64, 32>}, {pipeline_mode = #tpu.pipeline_mode<synchronous>, transform_indices = @transform_2, window_bounds = array<i64: 32, 32>}, {pipeline_mode = #tpu.pipeline_mode<synchronous>, transform_indices = @transform_3, window_bounds = array<i64: 1, 32>}, {pipeline_mode = #tpu.pipeline_mode<synchronous>, transform_indices = @transform_4, window_bounds = array<i64: 32, 32>}, {pipeline_mode = #tpu.pipeline_mode<synchronous>, transform_indices = @transform_5, window_bounds = array<i64: 1, 32>}, {transform_indices = @transform_6, window_bounds = array<i64: 16, 32>}, {transform_indices = @transform_7, window_bounds = array<i64: 16, 32>}]} {
    %c0 = arith.constant 0 : index
    %c0_0 = arith.constant 0 : index
    %0 = vector.load %arg1[%c0, %c0_0] : memref<16x1xi32, #tpu.memory_space<vmem>>, vector<16x1xi32>
    %1 = tpu.iota {dimensions = array<i32: 1>} : vector<16x64xi32>
    %2 = vector.broadcast %0 : vector<16x1xi32> to vector<16x64xi32>
    %3 = arith.cmpi eq, %2, %1 : vector<16x64xi32>
    %4 = arith.extui %3 : vector<16x64xi1> to vector<16x64xi32>
    %5 = arith.sitofp %4 : vector<16x64xi32> to vector<16x64xf32>
    %c0_1 = arith.constant 0 : index
    %c0_2 = arith.constant 0 : index
    %6 = vector.load %arg2[%c0_1, %c0_2] : memref<64x32xf32, #tpu.memory_space<vmem>>, vector<64x32xf32>
    %cst = arith.constant dense<0.000000e+00> : vector<16x32xf32>
    %7 = tpu.matmul %5, %6, %cst {dimension_numbers = #tpu.dot_dimension_numbers<[1], [0], [0], [1], [0, 0, 1, 1], [], []>} : vector<16x64xf32>, vector<64x32xf32>, vector<16x32xf32> -> vector<16x32xf32>
    %c0_3 = arith.constant 0 : index
    %c0_4 = arith.constant 0 : index
    %8 = vector.load %arg7[%c0_3, %c0_4] : memref<16x32xf32, #tpu.memory_space<vmem>>, vector<16x32xf32>
    tpu.vector_store %arg7[%c0_3, %c0_4], %7 {strides = array<i32>} : memref<16x32xf32, #tpu.memory_space<vmem>>, vector<16x32xf32>,
    %9 = arith.truncf %7 : vector<16x32xf32> to vector<16x32xbf16>
    %c0_5 = arith.constant 0 : index
    %c0_6 = arith.constant 0 : index
    %10 = vector.load %arg3[%c0_5, %c0_6] : memref<32x32xbf16, #tpu.memory_space<vmem>>, vector<32x32xbf16>
    %cst_7 = arith.constant dense<0.000000e+00> : vector<16x32xf32>
    %11 = tpu.matmul %9, %10, %cst_7 {dimension_numbers = #tpu.dot_dimension_numbers<[1], [0], [0], [1], [0, 0, 1, 1], [], []>} : vector<16x32xbf16>, vector<32x32xbf16>, vector<16x32xf32> -> vector<16x32xf32>
    %c0_8 = arith.constant 0 : index
    %c0_9 = arith.constant 0 : index
    %12 = vector.load %arg4[%c0_8, %c0_9] : memref<1x32xf32, #tpu.memory_space<vmem>>, vector<1x32xf32>
    %13 = vector.broadcast %12 : vector<1x32xf32> to vector<16x32xf32>
    %14 = arith.addf %11, %13 : vector<16x32xf32>
    %cst_10 = arith.constant 5.000000e-01 : f32
    %15 = vector.broadcast %cst_10 : f32 to vector<16x32xf32>
    %16 = arith.mulf %15, %14 : vector<16x32xf32>
    %cst_11 = arith.constant 0.707106769 : f32
    %17 = vector.broadcast %cst_11 : f32 to vector<16x32xf32>
    %18 = arith.mulf %14, %17 : vector<16x32xf32>
    %19 = math.erf %18 : vector<16x32xf32>
    %cst_12 = arith.constant 1.000000e+00 : f32
    %20 = vector.broadcast %cst_12 : f32 to vector<16x32xf32>
    %21 = arith.addf %20, %19 : vector<16x32xf32>
    %22 = arith.mulf %16, %21 : vector<16x32xf32>
    %23 = arith.truncf %22 : vector<16x32xf32> to vector<16x32xbf16>
    %c0_13 = arith.constant 0 : index
    %c0_14 = arith.constant 0 : index
    %24 = vector.load %arg5[%c0_13, %c0_14] : memref<32x32xbf16, #tpu.memory_space<vmem>>, vector<32x32xbf16>
    %cst_15 = arith.constant dense<0.000000e+00> : vector<16x32xf32>
    %25 = tpu.matmul %23, %24, %cst_15 {dimension_numbers = #tpu.dot_dimension_numbers<[1], [0], [0], [1], [0, 0, 1, 1], [], []>} : vector<16x32xbf16>, vector<32x32xbf16>, vector<16x32xf32> -> vector<16x32xf32>
    %c0_16 = arith.constant 0 : index
    %c0_17 = arith.constant 0 : index
    %26 = vector.load %arg6[%c0_16, %c0_17] : memref<1x32xf32, #tpu.memory_space<vmem>>, vector<1x32xf32>
    %27 = vector.broadcast %26 : vector<1x32xf32> to vector<16x32xf32>
    %28 = arith.addf %25, %27 : vector<16x32xf32>
    %cst_18 = arith.constant 5.000000e-01 : f32
    %29 = vector.broadcast %cst_18 : f32 to vector<16x32xf32>
    %30 = arith.mulf %29, %28 : vector<16x32xf32>
    %cst_19 = arith.constant 0.707106769 : f32
    %31 = vector.broadcast %cst_19 : f32 to vector<16x32xf32>
    %32 = arith.mulf %28, %31 : vector<16x32xf32>
    %33 = math.erf %32 : vector<16x32xf32>
    %cst_20 = arith.constant 1.000000e+00 : f32
    %34 = vector.broadcast %cst_20 : f32 to vector<16x32xf32>
    %35 = arith.addf %34, %33 : vector<16x32xf32>
    %36 = arith.mulf %30, %35 : vector<16x32xf32>
    %c0_21 = arith.constant 0 : index
    %c0_22 = arith.constant 0 : index
    %37 = vector.load %arg8[%c0_21, %c0_22] : memref<16x32xf32, #tpu.memory_space<vmem>>, vector<16x32xf32>
    tpu.vector_store %arg8[%c0_21, %c0_22], %36 {strides = array<i32>} : memref<16x32xf32, #tpu.memory_space<vmem>>, vector<16x32xf32>,
    return
  }
  func.func @transform_0(%arg0: i32) -> (i32, i32) {
    %c0_i32 = arith.constant 0 : i32
    %c0_i32_0 = arith.constant 0 : i32
    return %arg0, %c0_i32 : i32, i32
  }
  func.func @transform_1(%arg0: i32) -> (i32, i32) {
    %c0_i32 = arith.constant 0 : i32
    %c0_i32_0 = arith.constant 0 : i32
    %c0_i32_1 = arith.constant 0 : i32
    return %c0_i32, %c0_i32_0 : i32, i32
  }
  func.func @transform_2(%arg0: i32) -> (i32, i32) {
    %c0_i32 = arith.constant 0 : i32
    %c0_i32_0 = arith.constant 0 : i32
    %c0_i32_1 = arith.constant 0 : i32
    return %c0_i32, %c0_i32_0 : i32, i32
  }
  func.func @transform_3(%arg0: i32) -> (i32, i32) {
    %c0_i32 = arith.constant 0 : i32
    %c0_i32_0 = arith.constant 0 : i32
    %c0_i32_1 = arith.constant 0 : i32
    return %c0_i32, %c0_i32_0 : i32, i32
  }
  func.func @transform_4(%arg0: i32) -> (i32, i32) {
    %c0_i32 = arith.constant 0 : i32
    %c0_i32_0 = arith.constant 0 : i32
    %c0_i32_1 = arith.constant 0 : i32
    return %c0_i32, %c0_i32_0 : i32, i32
  }
  func.func @transform_5(%arg0: i32) -> (i32, i32) {
    %c0_i32 = arith.constant 0 : i32
    %c0_i32_0 = arith.constant 0 : i32
    %c0_i32_1 = arith.constant 0 : i32
    return %c0_i32, %c0_i32_0 : i32, i32
  }
  func.func @transform_6(%arg0: i32) -> (i32, i32) {
    %c0_i32 = arith.constant 0 : i32
    %c0_i32_0 = arith.constant 0 : i32
    return %arg0, %c0_i32 : i32, i32
  }
  func.func @transform_7(%arg0: i32) -> (i32, i32) {
    %c0_i32 = arith.constant 0 : i32
    %c0_i32_0 = arith.constant 0 : i32
    return %arg0, %c0_i32 : i32, i32
  }
}

</mosaic_0001>

<bundles_post_ra>
// kernel: backbone_forward.1
= control target key start
LH: loop header
LB: loop body
LE: loop exit
PB: predicated region body
PF: predicated region fallthrough
CT: control target
= control target key end

     0   :  { %13 = vsyncpa [#allocation3], 0  ;;  %v474_v2 = vmov 0   ;;  %v475_v11 = vmov 0.0   ;;  %s605_s0 = inlined_call_operand.vmem [shape: s32[16,1], index: 0, kind: input, shape index: {}]   ;;  %s606_s1 = inlined_call_operand.vmem [shape: f32[64,32], index: 1, kind: input, shape index: {}]   ;;  %s607_s2 = inlined_call_operand.vmem [shape: bf16[32,32], index: 2, kind: input, shape index: {}]   ;;  %s608_s3 = inlined_call_operand.vmem [shape: f32[1,32], index: 3, kind: input, shape index: {}]   ;;  %s609_s4 = inlined_call_operand.vmem [shape: bf16[32,32], index: 4, kind: input, shape index: {}]   ;;  %s610_s5 = inlined_call_operand.vmem [shape: f32[1,32], index: 5, kind: input, shape index: {}]   ;;  %s611_s6 = inlined_call_operand.hbm [shape: f32[16,32], index: 6, kind: output, shape index: {0}]   ;;  %s612_s7 = inlined_call_operand.hbm [shape: f32[16,32], index: 7, kind: output, shape index: {1}]  }
   0x1   :  { %v28_v0 = vld [vmem:[%s605_s0] sm:$0xff]  ;;  %413 = vset.pattern.permute.xlu0 %v474_v2  ;;  %v45_v3 = vld [vmem:[%s606_s1 + $0x8] sm:$0xff]  ;;  %v46_v4 = vld [vmem:[%s606_s1 + $0x10] sm:$0xff]  ;;  %374 = vmatprep.subr.bf16.mxu1 %v475_v11 }
   0x2   :  { %v44_v1 = vld [vmem:[%s606_s1] sm:$0xff]  ;;  %v47_v5 = vld [vmem:[%s606_s1 + $0x18] sm:$0xff]  ;;  %33 = vperm.xlu0 %413, %v28_v0   ;;  %v29_v6 = vld [vmem:[%s605_s0 + $0x8] sm:$0xff] }
   0x3   :  { %v390_v7 = vpack.c.bf16 %v45_v3, %v44_v1  ;;  %v394_v8 = vpack.c.bf16 %v47_v5, %v46_v4  ;;  %v48_v9 = vld [vmem:[%s606_s1 + $0x20] sm:$0xff]  ;;  %v49_v10 = vld [vmem:[%s606_s1 + $0x28] sm:$0xff] }
   0x4   :  { %v398_v12 = vpack.c.bf16 %v49_v10, %v48_v9 }
   0x5   :  { %391 = vmatprep.subr.bf16.mxu0 %v390_v7 }
   0x6   :  { %393 = vmatpush3.bf16.msra.mxu0 %v390_v7  ;;  %36 = vperm.xlu0 %413, %v29_v6  }
   0x7   :  { %395 = vmatprep.subr.bf16.mxu0 %v394_v8 }
   0x8   :  { %14 = vsyncpa [#allocation5], 0  ;;  %v50_v13 = vld [vmem:[%s606_s1 + $0x30] sm:$0xff]  ;;  %v51_v14 = vld [vmem:[%s606_s1 + $0x38] sm:$0xff]  ;;  %v30_v17 = vlaneseq  ;;  %vm52_vm0 = vcmask 523264   ;;  %vm476_vm3 = vmmov 0  }
   0x9   :  { %v414_v15 = vld [vmem:[%s607_s2] sm:$0xff]   ;;  %v402_v16 = vpack.c.bf16 %v51_v14, %v50_v13  ;;  %v415_v23 = vld [vmem:[%s607_s2 + $0x8] sm:$0xff]   ;;  %378 = vmatprep.mubr.msk.bf16.mxu1 %vm476_vm3, %v475_v11  ;;  %vm134_vm4 = vcmask 261120  }
   0xa   :  { %397 = vmatpush3.bf16.msra.mxu0 %v394_v8  ;;  %375 = vmatpush3.bf16.msra.mxu1 %v414_v15  ;;  %v31_v18 = vand.u32 127, %v30_v17  ;;  %v416_v27 = vld [vmem:[%s609_s4] sm:$0xff]   ;;  %v417_v28 = vld [vmem:[%s609_s4 + $0x8] sm:$0xff]  }
   0xb   :  { %399 = vmatprep.subr.bf16.mxu0 %v398_v12  ;;  %376 = vmatprep.subr.bf16.mxu1 %v475_v11  ;;  %v331_v29 = vld [vmem:[%s608_s3] ss:$0 sm:$0xff]  ;;  %s477_s3 = smov [#allocation2]  }
   0xc   :  { %s300_s4 = sshll.u32 %s477_s3, 4  ;;  %s301_s4 = int_to_ptr.vmem [resolvable:$true] %s300_s4 }
   0xd   :  { %s426_s28 = scalar_lea.vmem %s301_s4, 256  ;;  %p431_p1 = scmp.lt.s32.totalorder %s301_s4, %s301_s4 }
   0xe   :  { %401 = vmatpush3.bf16.msra.mxu0 %v398_v12  ;;  %377 = vmatpush3.bf16.msra.mxu1 %v415_v23  ;;  %p427_p0 = scmp.ne.s32.totalorder %s301_s4, %s426_s28  ;;  %p432_p2 = scmp.lt.s32.totalorder %s426_s28, %s426_s28 }
   0xf   :  { %403 = vmatprep.subr.bf16.mxu0 %v402_v16  ;;  %382 = vmatprep.subr.bf16.mxu1 %v475_v11 }
  0x10   :  { %p433_p3 = por %p432_p2, %p431_p1 }
  0x12   :  { %405 = vmatpush3.bf16.msra.mxu0 %v402_v16  ;;  %p434_p4 = pnand %p433_p3, %p427_p0 }
  0x81   :  { %v34_v19 = vpop.permute.xlu0 %33 }
  0x82   :  { %vm38_vm1 = vcmp.eq.s32.totalorder %v34_v19, %v31_v18 }
  0x83   :  { %v327_v20 = vsel %vm38_vm1, 1.0, %v475_v11 }
  0x84   :  { %371 = vmatprep.mubr.msk.f32.mxu0 %vm52_vm0, %v327_v20 }
  0x85   :  { %v37_v21 = vpop.permute.xlu0 %36 }
  0x86   :  { %vm39_vm2 = vcmp.eq.s32.totalorder %v37_v21, %v31_v18 }
  0x87   :  { %v328_v22 = vsel %vm39_vm2, 1.0, %v475_v11 }
  0x88   :  { %372 = vmatmul.mubr.msk.f32.vlgmr.msra.gmra.mrb[0].mxu0 %vm52_vm0, %v328_v22 }
 0x15b   :  { %v373_v24 = vpop.f32.mrb[0].mxu0 }
 0x15c   :  { %136 = vst.msk [vmem:[#allocation2 + $0x8] sm:$0xff] %vm134_vm4, %v373_v24  ;;  %v125_v25 = vpop.f32.mrb[1].mxu0 }
 0x15d   :  { %135 = vst.msk [vmem:[#allocation2] sm:$0xff] %vm134_vm4, %v125_v25  ;;  %v137_v26 = vpack.c.bf16 %v373_v24, %v125_v25 }
 0x15f   :  { %379 = vmatmul.mubr.msk.bf16.vlgmr.msra.gmra.mrb[0].mxu1 %vm134_vm4, %v137_v26 }
 0x160   :  { %386 = vmatprep.mubr.msk.bf16.mxu1 %vm476_vm3, %v475_v11  ;;  %383 = vmatpush3.bf16.msra.mxu1 %v416_v27 }
 0x161   :  { %384 = vmatprep.subr.bf16.mxu1 %v475_v11 }
 0x164   :  { %385 = vmatpush3.bf16.msra.mxu1 %v417_v28 }
 0x232   :  { %v198_v30 = vpop.f32.mrb[0].mxu1 }
 0x233   :  { %v199_v31 = vadd.f32 %v331_v29, %v198_v30  ;;  %v380_v32 = vpop.f32.mrb[1].mxu1 }
 0x234   :  { %v201_v33 = vpop.f32.mrb[2].mxu1 }
 0x235   :  { %v207_v34 = vmul.f32 0.70710677, %v199_v31  ;;  %v202_v35 = vadd.f32 %v331_v29, %v201_v33  ;;  %v381_v36 = vpop.f32.mrb[3].mxu1  ;;  %v205_v41 = vmul.f32 0.5, %v199_v31 }
 0x237   :  { %418 = verf.f32 %v207_v34  ;;  %v208_v37 = vmul.f32 0.70710677, %v202_v35  ;;  %v206_v42 = vmul.f32 0.5, %v202_v35 }
 0x239   :  { %420 = verf.f32 %v208_v37 }
 0x241   :  { %v419_v38 = vpop.eup %418 }
 0x242   :  { %v211_v39 = vadd.f32 1.0, %v419_v38 }
 0x243   :  { %v421_v40 = vpop.eup %420 }
 0x244   :  { %v212_v43 = vadd.f32 1.0, %v421_v40  ;;  %v213_v44 = vmul.f32 %v211_v39, %v205_v41 }
 0x246   :  { %v214_v45 = vmul.f32 %v212_v43, %v206_v42 }
 0x248   :  { %v215_v46 = vpack.c.bf16 %v214_v45, %v213_v44 }
 0x24a   :  { %387 = vmatmul.mubr.msk.bf16.vlgmr.msra.gmra.mrb[4].mxu1 %vm134_vm4, %v215_v46 }
 0x24b   :  { %437 = shalt.err (!%p434_p4)
}
 0x24c   :  { %s438_s8 = scalar_lea.hbm %s611_s6, 256 }
 0x24d   :  { %p439_p5 = scmp.ne.s32.totalorder %s611_s6, %s438_s8  ;;  %p442_p6 = scmp.lt.u32.totalorder %s438_s8, %s611_s6 }
 0x24f   :  { %p444_p7 = pnand %p442_p6, %p439_p5 }
 0x251   :  { %447 = shalt.err (!%p444_p7)
}
 0x252   :  { %s478_s13 = smov 128   ;;  %s479_s14 = smov 8   ;;  %v335_v47 = vld [vmem:[%s610_s5] ss:$0 sm:$0xff] }
 0x253   :  { %306 = dma.vmem_to_hbm [thread:$0]  %s301_s4, 256, %s611_s6, [#allocation3], %s478_s13, %s478_s13, %s479_s14  }
 0x254   :  { %s480_s18 = smov [#allocation4]  }
 0x255   :  { %s312_s6 = sshll.u32 %s480_s18, 4  ;;  %s313_s6 = int_to_ptr.vmem [resolvable:$true] %s312_s6 }
 0x256   :  { %s448_s5 = scalar_lea.vmem %s313_s6, 256  ;;  %p453_p9 = scmp.lt.s32.totalorder %s313_s6, %s313_s6 }
 0x257   :  { %p449_p8 = scmp.ne.s32.totalorder %s313_s6, %s448_s5  ;;  %p454_p10 = scmp.lt.s32.totalorder %s448_s5, %s448_s5 }
 0x259   :  { %p455_p11 = por %p454_p10, %p453_p9 }
 0x25b   :  { %p456_p12 = pnand %p455_p11, %p449_p8 }
 0x31d   :  { %v276_v48 = vpop.f32.mrb[4].mxu1 }
 0x31e   :  { %v277_v49 = vadd.f32 %v335_v47, %v276_v48  ;;  %v388_v50 = vpop.f32.mrb[5].mxu1 }
 0x31f   :  { %v279_v51 = vpop.f32.mrb[6].mxu1 }
 0x320   :  { %v285_v52 = vmul.f32 0.70710677, %v277_v49  ;;  %v280_v53 = vadd.f32 %v335_v47, %v279_v51  ;;  %v389_v54 = vpop.f32.mrb[7].mxu1  ;;  %v283_v57 = vmul.f32 0.5, %v277_v49 }
 0x322   :  { %422 = verf.f32 %v285_v52  ;;  %v286_v55 = vmul.f32 0.70710677, %v280_v53  ;;  %v284_v61 = vmul.f32 0.5, %v280_v53 }
 0x324   :  { %424 = verf.f32 %v286_v55 }
 0x32c   :  { %v423_v56 = vpop.eup %422 }
 0x32d   :  { %v289_v58 = vadd.f32 1.0, %v423_v56 }
 0x32e   :  { %v425_v59 = vpop.eup %424 }
 0x32f   :  { %v291_v60 = vmul.f32 %v289_v58, %v283_v57  ;;  %v290_v62 = vadd.f32 1.0, %v425_v59 }
 0x331   :  { %293 = vst.msk [vmem:[#allocation4] sm:$0xff] %vm134_vm4, %v291_v60  ;;  %v292_v63 = vmul.f32 %v290_v62, %v284_v61 }
 0x333   :  { %294 = vst.msk [vmem:[#allocation4 + $0x8] sm:$0xff] %vm134_vm4, %v292_v63 }
 0x334   :  { %459 = shalt.err (!%p456_p12)
}
 0x335   :  { %s460_s21 = scalar_lea.hbm %s612_s7, 256 }
 0x336   :  { %p461_p13 = scmp.ne.s32.totalorder %s612_s7, %s460_s21  ;;  %p464_p0 = scmp.lt.u32.totalorder %s460_s21, %s612_s7 }
 0x338   :  { %p466_p1 = pnand %p464_p0, %p461_p13 }
 0x33a   :  { %469 = shalt.err (!%p466_p1)
}
 0x33b   :  { %318 = dma.vmem_to_hbm [thread:$0]  %s313_s6, 256, %s612_s7, [#allocation5], %s478_s13, %s478_s13, %s479_s14  }
 0x33c   :  { %470 = dma.done.wait [#allocation3], 256  }
 0x33d   :  { %471 = vsyncadd [#allocation3], 4294967040 }
 0x33e   :  { %472 = dma.done.wait [#allocation5], 256  }
 0x33f   :  { %473 = vsyncadd [#allocation5], 4294967040 }
 0x340   :  { %325 = vsyncpa [#allocation3], 1 }
 0x341   :  { %326 = vsyncpa [#allocation5], 1 }

</bundles_post_ra>
